<compile_context>
chip_gen: v7x
topology: tpu7x:2x2x1
jax: 0.10.0
libtpu: 0.0.40
codegen_flags: <defaults>
</compile_context>

<pallas_src>
import functools

import jax
import jax.numpy as jnp
from jax.experimental import pallas as pl
from jax.experimental.pallas import tpu as pltpu


# ----------------------------- exact GELU (erf via polynomial) -----------------------------

_ERF_P = 0.3275911
_ERF_A1 = 0.254829592
_ERF_A2 = -0.284496736
_ERF_A3 = 1.421413741
_ERF_A4 = -1.453152027
_ERF_A5 = 1.061405429
_INV_SQRT2 = 0.7071067811865475


def _erf_poly(x):
    """Abramowitz & Stegun 7.1.26 erf approximation (max abs err ~1.5e-7), exp -> EUP slot."""
    s = jnp.where(x >= 0.0, 1.0, -1.0)
    a = jnp.abs(x)
    t = 1.0 / (1.0 + _ERF_P * a)
    poly = ((((_ERF_A5 * t + _ERF_A4) * t + _ERF_A3) * t + _ERF_A2) * t + _ERF_A1) * t
    return s * (1.0 - poly * jnp.exp(-a * a))


def _gelu_exact(x):
    """torch nn.GELU() default (exact erf form), within ~2e-6 absolute."""
    return 0.5 * x * (1.0 + _erf_poly(x * _INV_SQRT2))


# ------------------------------------- kernels ---------------------------------------------


def _ffn_kernel_resident(x_ref, lnw_ref, lnb_ref, w1_ref, b1_ref, w2_ref, b2_ref, o_ref):
    """One row-tile, whole bf16 weights resident in VMEM (Buffered(1))."""
    x = x_ref[...].astype(jnp.float32)

    # LayerNorm over last dim, f32, eps matches torch default 1e-5.
    mean = jnp.mean(x, axis=-1, keepdims=True)
    xc = x - mean
    var = jnp.mean(xc * xc, axis=-1, keepdims=True)
    inv = jax.lax.rsqrt(var + 1e-5)
    xn = xc * inv * lnw_ref[...].astype(jnp.float32) + lnb_ref[...].astype(jnp.float32)

    # Linear(dim -> hidden_dim): bf16 operands, f32 accumulation on the MXU.
    h = jnp.dot(xn.astype(jnp.bfloat16), w1_ref[...], preferred_element_type=jnp.float32)
    h = h + b1_ref[...].astype(jnp.float32)
    h = _gelu_exact(h)
    # (Dropout: identity at inference.)

    # Linear(hidden_dim -> dim): bf16 operands, f32 accumulation.
    y = jnp.dot(h.astype(jnp.bfloat16), w2_ref[...], preferred_element_type=jnp.float32)
    y = y + b2_ref[...].astype(jnp.float32)

    o_ref[...] = y.astype(o_ref.dtype)


def _ffn_kernel_hsplit(x_ref, lnw_ref, lnb_ref, w1_ref, b1_ref, w2_ref, b2_ref, o_ref,
                       xn_ref, acc_ref):
    """Row-tile x H-slab reduction grid: weights streamed, f32 accumulator in VMEM scratch."""
    k = pl.program_id(1)

    @pl.when(k == 0)
    def _():
        x = x_ref[...].astype(jnp.float32)
        mean = jnp.mean(x, axis=-1, keepdims=True)
        xc = x - mean
        var = jnp.mean(xc * xc, axis=-1, keepdims=True)
        inv = jax.lax.rsqrt(var + 1e-5)
        xn = xc * inv * lnw_ref[...].astype(jnp.float32) + lnb_ref[...].astype(jnp.float32)
        xn_ref[...] = xn.astype(jnp.bfloat16)
        acc_ref[...] = jnp.zeros_like(acc_ref)

    h = jnp.dot(xn_ref[...], w1_ref[...], preferred_element_type=jnp.float32)
    h = h + b1_ref[...].astype(jnp.float32)
    h = _gelu_exact(h)
    # (Dropout: identity at inference.)
    acc_ref[...] += jnp.dot(h.astype(jnp.bfloat16), w2_ref[...],
                            preferred_element_type=jnp.float32)

    @pl.when(k == pl.num_programs(1) - 1)
    def _():
        y = acc_ref[...] + b2_ref[...].astype(jnp.float32)
        o_ref[...] = y.astype(o_ref.dtype)


# ------------------------------------- wrapper ---------------------------------------------


def _round_up(x, m):
    return (x + m - 1) // m * m


def _vmem_cap_bytes():
    """Generation-aware usable-VMEM cap (leave headroom for Mosaic internal scratch)."""
    try:
        cap = int(pltpu.get_tpu_info().vmem_capacity_bytes)
    except Exception:  # query unavailable -> assume the smallest (v7x per-TC) VMEM
        cap = 64 * 1024 * 1024
    return max(min(int(cap * 0.75), cap - (16 << 20)), 16 << 20)


def _pick_th(H, target=512):
    """Largest multiple of 128 that divides H and is <= target (must divide H exactly so that
    no garbage weight columns/rows enter the accumulation)."""
    best = None
    t = 128
    while t <= min(H, target):
        if H % t == 0:
            best = t
        t += 128
    return best if best is not None else H


def prepare_ffn_params(ln_w, ln_b, w1, b1, w2, b2):
    """One-time (outside jit / outside the hot path) cast + reshape of the parameters."""
    D, H = w1.shape
    return (ln_w.reshape(1, D).astype(jnp.float32),
            ln_b.reshape(1, D).astype(jnp.float32),
            w1.astype(jnp.bfloat16),
            b1.reshape(1, H).astype(jnp.float32),
            w2.astype(jnp.bfloat16),
            b2.reshape(1, D).astype(jnp.float32))


@functools.partial(jax.jit, static_argnames=("tm", "force_hsplit"))
def feedforward(x, lnw2, lnb2, w1_b, b1_2, w2_b, b2_2, *, tm=256, force_hsplit=False):
    assert tm % 8 == 0
    B, S, D = x.shape
    H = w1_b.shape[1]
    M = B * S
    x2 = x.reshape(M, D)

    # Row tile: multiple of 16 (bf16 sublane pack) and never larger than needed.
    tm_eff = min(tm, _round_up(M, 16))
    num_m = pl.cdiv(M, tm_eff)
    x_bytes = x2.dtype.itemsize
    cap = _vmem_cap_bytes()

    cost = pl.CostEstimate(
        flops=2 * 2 * M * D * H,                           # two matmuls
        transcendentals=M * H,                             # exp in the erf polynomial (GELU)
        bytes_accessed=(2 * M * D * x_bytes                # read x, write out
                        + (D * H + H * D) * 2              # bf16 weights
                        + (3 * D + H) * 4),                # LN params + biases
    )

    # VMEM estimate for the resident-weight path (Buffered(1) weights => single copy).
    resident_est = (4 * tm_eff * D * x_bytes               # x + out tiles, double-buffered
                    + (D * H + H * D) * 2                  # bf16 W1 + W2 (single-buffered)
                    + (3 * D + H) * 4                      # LN params + biases
                    + 5 * tm_eff * H * 4                   # materialized (tm,H) f32/bf16 stages
                    + 2 * tm_eff * D * 4)                  # f32 xn / y stages

    if (not force_hsplit) and resident_est <= cap:
        vmem_limit = min(max(int(resident_est * 1.25), 32 << 20), cap)
        out = pl.pallas_call(
            _ffn_kernel_resident,
            out_shape=jax.ShapeDtypeStruct((M, D), x.dtype),
            grid_spec=pltpu.PrefetchScalarGridSpec(
                num_scalar_prefetch=0,
                grid=(num_m,),
                in_specs=[
                    pl.BlockSpec((tm_eff, D), lambda i: (i, 0)),                               # x
                    pl.BlockSpec((1, D), lambda i: (0, 0), pipeline_mode=pl.Buffered(1)),      # ln w
                    pl.BlockSpec((1, D), lambda i: (0, 0), pipeline_mode=pl.Buffered(1)),      # ln b
                    pl.BlockSpec((D, H), lambda i: (0, 0), pipeline_mode=pl.Buffered(1)),      # W1
                    pl.BlockSpec((1, H), lambda i: (0, 0), pipeline_mode=pl.Buffered(1)),      # b1
                    pl.BlockSpec((H, D), lambda i: (0, 0), pipeline_mode=pl.Buffered(1)),      # W2
                    pl.BlockSpec((1, D), lambda i: (0, 0), pipeline_mode=pl.Buffered(1)),      # b2
                ],
                out_specs=pl.BlockSpec((tm_eff, D), lambda i: (i, 0)),
            ),
            compiler_params=pltpu.CompilerParams(
                dimension_semantics=("parallel",),
                vmem_limit_bytes=int(vmem_limit),
            ),
            cost_estimate=cost,
        )(x2, lnw2, lnb2, w1_b, b1_2, w2_b, b2_2)
    else:
        # H-axis reduction grid: weights streamed in slabs, f32 accumulator in VMEM scratch.
        tH = _pick_th(H)
        num_k = H // tH
        split_est = (4 * tm_eff * D * x_bytes
                     + 2 * (D * tH + tH * D) * 2           # double-buffered weight slabs
                     + 3 * D * 4 + 2 * 2 * tH * 4          # LN params + streamed b1 + b2
                     + 5 * tm_eff * tH * 4                 # (tm,tH) f32/bf16 stages
                     + tm_eff * D * 2 + tm_eff * D * 4)    # xn bf16 scratch + f32 accumulator
        vmem_limit = min(max(int(split_est * 1.25), 32 << 20), cap)
        out = pl.pallas_call(
            _ffn_kernel_hsplit,
            out_shape=jax.ShapeDtypeStruct((M, D), x.dtype),
            grid_spec=pltpu.PrefetchScalarGridSpec(
                num_scalar_prefetch=0,
                grid=(num_m, num_k),
                in_specs=[
                    pl.BlockSpec((tm_eff, D), lambda i, k: (i, 0)),                             # x
                    pl.BlockSpec((1, D), lambda i, k: (0, 0), pipeline_mode=pl.Buffered(1)),    # ln w
                    pl.BlockSpec((1, D), lambda i, k: (0, 0), pipeline_mode=pl.Buffered(1)),    # ln b
                    pl.BlockSpec((D, tH), lambda i, k: (0, k)),                                 # W1 slab
                    pl.BlockSpec((1, tH), lambda i, k: (0, k)),                                 # b1 slab
                    pl.BlockSpec((tH, D), lambda i, k: (k, 0)),                                 # W2 slab
                    pl.BlockSpec((1, D), lambda i, k: (0, 0), pipeline_mode=pl.Buffered(1)),    # b2
                ],
                out_specs=pl.BlockSpec((tm_eff, D), lambda i, k: (i, 0)),
                scratch_shapes=[pltpu.VMEM((tm_eff, D), jnp.bfloat16),    # cached normalized x
                                pltpu.VMEM((tm_eff, D), jnp.float32)],    # f32 accumulator
            ),
            compiler_params=pltpu.CompilerParams(
                dimension_semantics=("parallel", "arbitrary"),
                vmem_limit_bytes=int(vmem_limit),
            ),
            cost_estimate=cost,
        )(x2, lnw2, lnb2, w1_b, b1_2, w2_b, b2_2)

    return out.reshape(B, S, D)


# ------------------------------------ references -------------------------------------------


def _reference_f32(x, ln_w, ln_b, w1, b1, w2, b2):
    """Pure f32 reference (matches the torch module numerically)."""
    xf = x.astype(jnp.float32)
    mean = jnp.mean(xf, axis=-1, keepdims=True)
    var = jnp.mean((xf - mean) ** 2, axis=-1, keepdims=True)
    xn = (xf - mean) * jax.lax.rsqrt(var + 1e-5) * ln_w + ln_b
    h = jax.nn.gelu(xn @ w1 + b1, approximate=False)
    return h @ w2 + b2


def _reference_matched(x, ln_w, ln_b, w1, b1, w2, b2):
    """Reference with the same precision recipe as the kernel (bf16 operands, f32 accum)."""
    xf = x.astype(jnp.float32)
    mean = jnp.mean(xf, axis=-1, keepdims=True)
    var = jnp.mean((xf - mean) ** 2, axis=-1, keepdims=True)
    xn = (xf - mean) * jax.lax.rsqrt(var + 1e-5) * ln_w + ln_b
    h = jnp.dot(xn.astype(jnp.bfloat16), w1.astype(jnp.bfloat16),
                preferred_element_type=jnp.float32) + b1
    h = jax.nn.gelu(h, approximate=False)
    y = jnp.dot(h.astype(jnp.bfloat16), w2.astype(jnp.bfloat16),
                preferred_element_type=jnp.float32) + b2
    return y


# --------------------------------------- test ----------------------------------------------

if __name__ == "__main__":
    # Small ViT-style shapes. S=9 -> M=18 rows (not a tile multiple) exercises the ragged
    # boundary-block handling that replaced the old pad/slice wrapper copies.
    B, S, D, H = 2, 9, 128, 256

    key = jax.random.PRNGKey(0)
    kx, kw1, kb1, kw2, kb2, klw, klb = jax.random.split(key, 7)

    x = jax.random.normal(kx, (B, S, D), dtype=jnp.float32)
    ln_w = 1.0 + 0.1 * jax.random.normal(klw, (D,), dtype=jnp.float32)
    ln_b = 0.1 * jax.random.normal(klb, (D,), dtype=jnp.float32)
    w1 = jax.random.normal(kw1, (D, H), dtype=jnp.float32) * (1.0 / jnp.sqrt(D))
    b1 = 0.1 * jax.random.normal(kb1, (H,), dtype=jnp.float32)
    w2 = jax.random.normal(kw2, (H, D), dtype=jnp.float32) * (1.0 / jnp.sqrt(H))
    b2 = 0.1 * jax.random.normal(kb2, (D,), dtype=jnp.float32)

    # One-time parameter preparation (bf16 weight cast / reshape hoisted out of the call path).
    params = prepare_ffn_params(ln_w, ln_b, w1, b1, w2, b2)

    ref_matched = _reference_matched(x, ln_w, ln_b, w1, b1, w2, b2)
    ref_f32 = _reference_f32(x, ln_w, ln_b, w1, b1, w2, b2)

    # 1) Default resident-weight path (single ragged row tile).
    out = jax.block_until_ready(feedforward(x, *params))
    assert out.shape == (B, S, D)
    assert jnp.allclose(out, ref_matched, atol=2e-3, rtol=2e-3), "mismatch vs matched-precision ref"
    assert jnp.allclose(out, ref_f32, atol=5e-2, rtol=5e-2), "mismatch vs f32 reference"

    # 2) Multi-tile ragged grid (tm=8 -> 3 row blocks, last one partial) -> masked boundary writes.
    out_small_tm = jax.block_until_ready(feedforward(x, *params, tm=8))
    assert jnp.allclose(out_small_tm, ref_matched, atol=2e-3, rtol=2e-3), "ragged-grid mismatch"

    # 3) H-axis reduction-grid fallback (large-H / v7x path), forced at small shapes to test it.
    out_split = jax.block_until_ready(feedforward(x, *params, force_hsplit=True))
    assert jnp.allclose(out_split, ref_matched, atol=2e-3, rtol=2e-3), "H-split path mismatch"

    print("KERNEL_OK")
</pallas_src>

<mosaic_0001>
module attributes {stable_mosaic.version = 11 : i64} {
  func.func @_ffn_kernel_resident(%arg0: i32, %arg1: memref<32x128xf32, #tpu.memory_space<vmem>>, %arg2: memref<1x128xf32, #tpu.memory_space<vmem>>, %arg3: memref<1x128xf32, #tpu.memory_space<vmem>>, %arg4: memref<128x256xbf16, #tpu.memory_space<vmem>>, %arg5: memref<1x256xf32, #tpu.memory_space<vmem>>, %arg6: memref<256x128xbf16, #tpu.memory_space<vmem>>, %arg7: memref<1x128xf32, #tpu.memory_space<vmem>>, %arg8: memref<32x128xf32, #tpu.memory_space<vmem>>) attributes {dimension_semantics = [#tpu.dimension_semantics<parallel>], iteration_bounds = array<i64: 1>, scalar_prefetch = 0 : i64, scratch_operands = 0 : i64, tpu.core_type = #tpu.core_type<tc>, window_params = [{transform_indices = @transform_0, window_bounds = array<i64: 32, 128>}, {pipeline_mode = #tpu.pipeline_mode<synchronous>, transform_indices = @transform_1, window_bounds = array<i64: 1, 128>}, {pipeline_mode = #tpu.pipeline_mode<synchronous>, transform_indices = @transform_2, window_bounds = array<i64: 1, 128>}, {pipeline_mode = #tpu.pipeline_mode<synchronous>, transform_indices = @transform_3, window_bounds = array<i64: 128, 256>}, {pipeline_mode = #tpu.pipeline_mode<synchronous>, transform_indices = @transform_4, window_bounds = array<i64: 1, 256>}, {pipeline_mode = #tpu.pipeline_mode<synchronous>, transform_indices = @transform_5, window_bounds = array<i64: 256, 128>}, {pipeline_mode = #tpu.pipeline_mode<synchronous>, transform_indices = @transform_6, window_bounds = array<i64: 1, 128>}, {transform_indices = @transform_7, window_bounds = array<i64: 32, 128>}]} {
    %c0 = arith.constant 0 : index
    %c0_0 = arith.constant 0 : index
    %0 = vector.load %arg1[%c0, %c0_0] : memref<32x128xf32, #tpu.memory_space<vmem>>, vector<32x128xf32>
    %cst = arith.constant dense<0.000000e+00> : vector<32xf32>
    %1 = vector.multi_reduction <add>, %0, %cst [1] : vector<32x128xf32> to vector<32xf32>
    %2 = vector.shape_cast %1 : vector<32xf32> to vector<32x1xf32>
    %cst_1 = arith.constant 1.280000e+02 : f32
    %3 = vector.broadcast %cst_1 : f32 to vector<32x1xf32>
    %4 = arith.divf %2, %3 : vector<32x1xf32>
    %5 = vector.broadcast %4 : vector<32x1xf32> to vector<32x128xf32>
    %6 = arith.subf %0, %5 : vector<32x128xf32>
    %7 = arith.mulf %6, %6 : vector<32x128xf32>
    %cst_2 = arith.constant dense<0.000000e+00> : vector<32xf32>
    %8 = vector.multi_reduction <add>, %7, %cst_2 [1] : vector<32x128xf32> to vector<32xf32>
    %9 = vector.shape_cast %8 : vector<32xf32> to vector<32x1xf32>
    %cst_3 = arith.constant 1.280000e+02 : f32
    %10 = vector.broadcast %cst_3 : f32 to vector<32x1xf32>
    %11 = arith.divf %9, %10 : vector<32x1xf32>
    %cst_4 = arith.constant 9.99999974E-6 : f32
    %12 = vector.broadcast %cst_4 : f32 to vector<32x1xf32>
    %13 = arith.addf %11, %12 : vector<32x1xf32>
    %14 = math.rsqrt %13 : vector<32x1xf32>
    %15 = vector.broadcast %14 : vector<32x1xf32> to vector<32x128xf32>
    %16 = arith.mulf %6, %15 : vector<32x128xf32>
    %c0_5 = arith.constant 0 : index
    %c0_6 = arith.constant 0 : index
    %17 = vector.load %arg2[%c0_5, %c0_6] : memref<1x128xf32, #tpu.memory_space<vmem>>, vector<1x128xf32>
    %18 = vector.broadcast %17 : vector<1x128xf32> to vector<32x128xf32>
    %19 = arith.mulf %16, %18 : vector<32x128xf32>
    %c0_7 = arith.constant 0 : index
    %c0_8 = arith.constant 0 : index
    %20 = vector.load %arg3[%c0_7, %c0_8] : memref<1x128xf32, #tpu.memory_space<vmem>>, vector<1x128xf32>
    %21 = vector.broadcast %20 : vector<1x128xf32> to vector<32x128xf32>
    %22 = arith.addf %19, %21 : vector<32x128xf32>
    %23 = arith.truncf %22 : vector<32x128xf32> to vector<32x128xbf16>
    %c0_9 = arith.constant 0 : index
    %c0_10 = arith.constant 0 : index
    %24 = vector.load %arg4[%c0_9, %c0_10] : memref<128x256xbf16, #tpu.memory_space<vmem>>, vector<128x256xbf16>
    %cst_11 = arith.constant dense<0.000000e+00> : vector<32x256xf32>
    %25 = tpu.matmul %23, %24, %cst_11 {dimension_numbers = #tpu.dot_dimension_numbers<[1], [0], [0], [1], [0, 0, 1, 1], [], []>} : vector<32x128xbf16>, vector<128x256xbf16>, vector<32x256xf32> -> vector<32x256xf32>
    %c0_12 = arith.constant 0 : index
    %c0_13 = arith.constant 0 : index
    %26 = vector.load %arg5[%c0_12, %c0_13] : memref<1x256xf32, #tpu.memory_space<vmem>>, vector<1x256xf32>
    %27 = vector.broadcast %26 : vector<1x256xf32> to vector<32x256xf32>
    %28 = arith.addf %25, %27 : vector<32x256xf32>
    %cst_14 = arith.constant 5.000000e-01 : f32
    %29 = vector.broadcast %cst_14 : f32 to vector<32x256xf32>
    %30 = arith.mulf %29, %28 : vector<32x256xf32>
    %cst_15 = arith.constant 0.707106769 : f32
    %31 = vector.broadcast %cst_15 : f32 to vector<32x256xf32>
    %32 = arith.mulf %28, %31 : vector<32x256xf32>
    %cst_16 = arith.constant 0.000000e+00 : f32
    %33 = vector.broadcast %cst_16 : f32 to vector<32x256xf32>
    %34 = arith.cmpf oge, %32, %33 : vector<32x256xf32>
    %cst_17 = arith.constant 1.000000e+00 : f32
    %cst_18 = arith.constant -1.000000e+00 : f32
    %35 = vector.broadcast %cst_17 : f32 to vector<32x256xf32>
    %36 = vector.broadcast %cst_18 : f32 to vector<32x256xf32>
    %37 = arith.select %34, %35, %36 : vector<32x256xi1>, vector<32x256xf32>
    %38 = math.absf %32 : vector<32x256xf32>
    %cst_19 = arith.constant 0.327591091 : f32
    %39 = vector.broadcast %cst_19 : f32 to vector<32x256xf32>
    %40 = arith.mulf %39, %38 : vector<32x256xf32>
    %cst_20 = arith.constant 1.000000e+00 : f32
    %41 = vector.broadcast %cst_20 : f32 to vector<32x256xf32>
    %42 = arith.addf %41, %40 : vector<32x256xf32>
    %cst_21 = arith.constant 1.000000e+00 : f32
    %43 = vector.broadcast %cst_21 : f32 to vector<32x256xf32>
    %44 = arith.divf %43, %42 : vector<32x256xf32>
    %cst_22 = arith.constant 1.06140542 : f32
    %45 = vector.broadcast %cst_22 : f32 to vector<32x256xf32>
    %46 = arith.mulf %45, %44 : vector<32x256xf32>
    %cst_23 = arith.constant -1.45315206 : f32
    %47 = vector.broadcast %cst_23 : f32 to vector<32x256xf32>
    %48 = arith.addf %46, %47 : vector<32x256xf32>
    %49 = arith.mulf %48, %44 : vector<32x256xf32>
    %cst_24 = arith.constant 1.42141378 : f32
    %50 = vector.broadcast %cst_24 : f32 to vector<32x256xf32>
    %51 = arith.addf %49, %50 : vector<32x256xf32>
    %52 = arith.mulf %51, %44 : vector<32x256xf32>
    %cst_25 = arith.constant -0.284496725 : f32
    %53 = vector.broadcast %cst_25 : f32 to vector<32x256xf32>
    %54 = arith.addf %52, %53 : vector<32x256xf32>
    %55 = arith.mulf %54, %44 : vector<32x256xf32>
    %cst_26 = arith.constant 0.254829586 : f32
    %56 = vector.broadcast %cst_26 : f32 to vector<32x256xf32>
    %57 = arith.addf %55, %56 : vector<32x256xf32>
    %58 = arith.mulf %57, %44 : vector<32x256xf32>
    %cst_27 = arith.constant 0.000000e+00 : f32
    %59 = vector.broadcast %cst_27 : f32 to vector<32x256xf32>
    %60 = arith.subf %59, %38 : vector<32x256xf32>
    %61 = arith.mulf %60, %38 : vector<32x256xf32>
    %62 = math.exp %61 : vector<32x256xf32>
    %63 = arith.mulf %58, %62 : vector<32x256xf32>
    %cst_28 = arith.constant 1.000000e+00 : f32
    %64 = vector.broadcast %cst_28 : f32 to vector<32x256xf32>
    %65 = arith.subf %64, %63 : vector<32x256xf32>
    %66 = arith.mulf %37, %65 : vector<32x256xf32>
    %cst_29 = arith.constant 1.000000e+00 : f32
    %67 = vector.broadcast %cst_29 : f32 to vector<32x256xf32>
    %68 = arith.addf %67, %66 : vector<32x256xf32>
    %69 = arith.mulf %30, %68 : vector<32x256xf32>
    %70 = arith.truncf %69 : vector<32x256xf32> to vector<32x256xbf16>
    %c0_30 = arith.constant 0 : index
    %c0_31 = arith.constant 0 : index
    %71 = vector.load %arg6[%c0_30, %c0_31] : memref<256x128xbf16, #tpu.memory_space<vmem>>, vector<256x128xbf16>
    %cst_32 = arith.constant dense<0.000000e+00> : vector<32x128xf32>
    %72 = tpu.matmul %70, %71, %cst_32 {dimension_numbers = #tpu.dot_dimension_numbers<[1], [0], [0], [1], [0, 0, 1, 1], [], []>} : vector<32x256xbf16>, vector<256x128xbf16>, vector<32x128xf32> -> vector<32x128xf32>
    %c0_33 = arith.constant 0 : index
    %c0_34 = arith.constant 0 : index
    %73 = vector.load %arg7[%c0_33, %c0_34] : memref<1x128xf32, #tpu.memory_space<vmem>>, vector<1x128xf32>
    %74 = vector.broadcast %73 : vector<1x128xf32> to vector<32x128xf32>
    %75 = arith.addf %72, %74 : vector<32x128xf32>
    %c0_35 = arith.constant 0 : index
    %c0_36 = arith.constant 0 : index
    %76 = vector.load %arg8[%c0_35, %c0_36] : memref<32x128xf32, #tpu.memory_space<vmem>>, vector<32x128xf32>
    tpu.vector_store %arg8[%c0_35, %c0_36], %75 {strides = array<i32>} : memref<32x128xf32, #tpu.memory_space<vmem>>, vector<32x128xf32>,
    return
  }
  func.func @transform_0(%arg0: i32) -> (i32, i32) {
    %c0_i32 = arith.constant 0 : i32
    %c0_i32_0 = arith.constant 0 : i32
    return %arg0, %c0_i32 : i32, i32
  }
  func.func @transform_1(%arg0: i32) -> (i32, i32) {
    %c0_i32 = arith.constant 0 : i32
    %c0_i32_0 = arith.constant 0 : i32
    %c0_i32_1 = arith.constant 0 : i32
    return %c0_i32, %c0_i32_0 : i32, i32
  }
  func.func @transform_2(%arg0: i32) -> (i32, i32) {
    %c0_i32 = arith.constant 0 : i32
    %c0_i32_0 = arith.constant 0 : i32
    %c0_i32_1 = arith.constant 0 : i32
    return %c0_i32, %c0_i32_0 : i32, i32
  }
  func.func @transform_3(%arg0: i32) -> (i32, i32) {
    %c0_i32 = arith.constant 0 : i32
    %c0_i32_0 = arith.constant 0 : i32
    %c0_i32_1 = arith.constant 0 : i32
    return %c0_i32, %c0_i32_0 : i32, i32
  }
  func.func @transform_4(%arg0: i32) -> (i32, i32) {
    %c0_i32 = arith.constant 0 : i32
    %c0_i32_0 = arith.constant 0 : i32
    %c0_i32_1 = arith.constant 0 : i32
    return %c0_i32, %c0_i32_0 : i32, i32
  }
  func.func @transform_5(%arg0: i32) -> (i32, i32) {
    %c0_i32 = arith.constant 0 : i32
    %c0_i32_0 = arith.constant 0 : i32
    %c0_i32_1 = arith.constant 0 : i32
    return %c0_i32, %c0_i32_0 : i32, i32
  }
  func.func @transform_6(%arg0: i32) -> (i32, i32) {
    %c0_i32 = arith.constant 0 : i32
    %c0_i32_0 = arith.constant 0 : i32
    %c0_i32_1 = arith.constant 0 : i32
    return %c0_i32, %c0_i32_0 : i32, i32
  }
  func.func @transform_7(%arg0: i32) -> (i32, i32) {
    %c0_i32 = arith.constant 0 : i32
    %c0_i32_0 = arith.constant 0 : i32
    return %arg0, %c0_i32 : i32, i32
  }
}

</mosaic_0001>

<bundles_post_ra>
// kernel: feedforward.1
= control target key start
LH: loop header
LB: loop body
LE: loop exit
PB: predicated region body
PF: predicated region fallthrough
CT: control target
= control target key end

     0   :  { %12 = vsyncpa [#allocation3], 0  ;;  %s1207_s0 = inlined_call_operand.vmem [shape: f32[18,128], index: 0, kind: input, shape index: {}]   ;;  %s1208_s1 = inlined_call_operand.vmem [shape: f32[1,128], index: 1, kind: input, shape index: {}]   ;;  %s1209_s2 = inlined_call_operand.vmem [shape: f32[1,128], index: 2, kind: input, shape index: {}]   ;;  %s1210_s3 = inlined_call_operand.hbm [shape: bf16[128,256], index: 3, kind: input, shape index: {}]   ;;  %s1211_s4 = inlined_call_operand.vmem [shape: f32[1,256], index: 4, kind: input, shape index: {}]   ;;  %s1212_s5 = inlined_call_operand.hbm [shape: bf16[256,128], index: 5, kind: input, shape index: {}]   ;;  %s1213_s6 = inlined_call_operand.vmem [shape: f32[1,128], index: 6, kind: input, shape index: {}]   ;;  %s1214_s7 = inlined_call_operand.vmem [shape: f32[18,128], index: 7, kind: output, shape index: {}]  }
   0x1   :  { %13 = vsyncpa [#allocation5], 0  ;;  %s946_s24 = smov [#allocation2]   ;;  %s898_s28 = scalar_lea.hbm %s1210_s3, 2048 }
   0x2   :  { %s25_s25 = sshll.u32 %s946_s24, 4  ;;  %p899_p0 = scmp.ne.s32.totalorder %s1210_s3, %s898_s28  ;;  %s26_s25 = int_to_ptr.vmem [resolvable:$true] %s25_s25 }
   0x3   :  { %p902_p1 = scmp.lt.u32.totalorder %s898_s28, %s1210_s3 }
   0x5   :  { %p904_p2 = pnand %p902_p1, %p899_p0 }
   0x7   :  { %907 = shalt.err (!%p904_p2)
}
   0x8   :  { %s908_s10 = scalar_lea.vmem %s26_s25, 2048  ;;  %p913_p4 = scmp.lt.s32.totalorder %s26_s25, %s26_s25 }
   0x9   :  { %p909_p3 = scmp.ne.s32.totalorder %s26_s25, %s908_s10  ;;  %p914_p5 = scmp.lt.s32.totalorder %s908_s10, %s908_s10 }
   0xb   :  { %p915_p6 = por %p914_p5, %p913_p4 }
   0xd   :  { %p916_p7 = pnand %p915_p6, %p909_p3 }
   0xf   :  { %919 = shalt.err (!%p916_p7)
}
  0x10   :  { %s947_s11 = smov 128   ;;  %s948_s12 = smov 8  }
  0x11   :  { %31 = dma.hbm_to_vmem [thread:$0]  %s1210_s3, 2048, %s26_s25, [#allocation3], %s947_s11, %s947_s11, %s948_s12  }
  0x12   :  { %s949_s15 = smov [#allocation4]   ;;  %s920_s19 = scalar_lea.hbm %s1212_s5, 2048 }
  0x13   :  { %s39_s16 = sshll.u32 %s949_s15, 4  ;;  %p921_p8 = scmp.ne.s32.totalorder %s1212_s5, %s920_s19  ;;  %s40_s16 = int_to_ptr.vmem [resolvable:$true] %s39_s16 }
  0x14   :  { %p924_p9 = scmp.lt.u32.totalorder %s920_s19, %s1212_s5 }
  0x16   :  { %p926_p10 = pnand %p924_p9, %p921_p8 }
  0x18   :  { %929 = shalt.err (!%p926_p10)
}
  0x19   :  { %s930_s24 = scalar_lea.vmem %s40_s16, 2048  ;;  %p935_p12 = scmp.lt.s32.totalorder %s40_s16, %s40_s16 }
  0x1a   :  { %p931_p11 = scmp.ne.s32.totalorder %s40_s16, %s930_s24  ;;  %p936_p13 = scmp.lt.s32.totalorder %s930_s24, %s930_s24 }
  0x1c   :  { %p937_p0 = por %p936_p13, %p935_p12 }
  0x1e   :  { %p938_p1 = pnand %p937_p0, %p931_p11 }
  0x20   :  { %941 = shalt.err (!%p938_p1)
}
  0x21   :  { %s950_s3 = smov 64   ;;  %s951_s25 = smov 4  }
  0x22   :  { %45 = dma.hbm_to_vmem [thread:$0]  %s1212_s5, 2048, %s40_s16, [#allocation5], %s950_s3, %s950_s3, %s951_s25  }
  0x23   :  { %942 = dma.done.wait [#allocation3], 2048  }
  0x24   :  { %943 = vsyncadd [#allocation3], 4294965248 }
  0x25   :  { %944 = dma.done.wait [#allocation5], 2048  }
  0x26   :  { %945 = vsyncadd [#allocation5], 4294965248  ;;  %v55_v0 = vld [vmem:[%s1207_s0] sm:$0xff]  ;;  %v57_v1 = vld [vmem:[%s1207_s0 + $0x10] sm:$0xff]  ;;  %v952_v33 = vmov 0  }
  0x27   :  { %v56_v2 = vld [vmem:[%s1207_s0 + $0x8] sm:$0xff]  ;;  %59 = vadd.xlane.f32.xlu0 %v55_v0  ;;  %63 = vadd.xlane.f32.xlu1 %v57_v1  ;;  %v58_v3 = vld [vmem:[%s1207_s0 + $0x18] sm:$0xff]  ;;  %v747_v51 = vld [vmem:[%s1208_s1] ss:$0 sm:$0xff] }
  0x28   :  { %v818_v4 = vld [vmem:[#allocation2 + $0x4] ss:$8 sps:$4 sm:$0xff]   ;;  %v820_v5 = vld [vmem:[#allocation2] ss:$8 sps:$4 sm:$0xff]   ;;  %v821_v6 = vld [vmem:[#allocation2 + $0x14] ss:$8 sps:$4 sm:$0xff]   ;;  %268 = vmatprep.mubr.bf16.mxu0 %v952_v33 }
  0x29   :  { %236 = vmatprep.subr.bf16.mxu0 %v818_v4  ;;  %v823_v23 = vld [vmem:[#allocation2 + $0x10] ss:$8 sps:$4 sm:$0xff]   ;;  %v824_v24 = vld [vmem:[#allocation2 + $0x24] ss:$8 sps:$4 sm:$0xff]   ;;  %v826_v25 = vld [vmem:[#allocation2 + $0x20] ss:$8 sps:$4 sm:$0xff]  }
  0x2a   :  { %237 = vmatpush1.bf16.msra.mxu0 %v820_v5  ;;  %v827_v26 = vld [vmem:[#allocation2 + $0x34] ss:$8 sps:$4 sm:$0xff]   ;;  %v829_v27 = vld [vmem:[#allocation2 + $0x30] ss:$8 sps:$4 sm:$0xff]   ;;  %v830_v28 = vld [vmem:[#allocation2 + $0x44] ss:$8 sps:$4 sm:$0xff]  }
  0x2b   :  { %61 = vadd.xlane.f32.xlu0 %v56_v2  ;;  %65 = vadd.xlane.f32.xlu1 %v58_v3  ;;  %v832_v29 = vld [vmem:[#allocation2 + $0x40] ss:$8 sps:$4 sm:$0xff]   ;;  %v833_v30 = vld [vmem:[#allocation2 + $0x54] ss:$8 sps:$4 sm:$0xff]   ;;  %v835_v31 = vld [vmem:[#allocation2 + $0x50] ss:$8 sps:$4 sm:$0xff]  }
  0x2c   :  { %238 = vmatprep.subr.bf16.mxu0 %v821_v6  ;;  %v836_v32 = vld [vmem:[#allocation2 + $0x64] ss:$8 sps:$4 sm:$0xff]   ;;  %v838_v34 = vld [vmem:[#allocation2 + $0x60] ss:$8 sps:$4 sm:$0xff]   ;;  %v839_v35 = vld [vmem:[#allocation2 + $0x74] ss:$8 sps:$4 sm:$0xff]  }
  0x2d   :  { %v841_v36 = vld [vmem:[#allocation2 + $0x70] ss:$8 sps:$4 sm:$0xff]   ;;  %v748_v56 = vld [vmem:[%s1209_s2] ss:$0 sm:$0xff] }
  0x2e   :  { %239 = vmatpush1.bf16.msra.mxu0 %v823_v23  ;;  %v842_v5 = vld [vmem:[#allocation4 + $0x40] sm:$0xff]  }
  0x2f   :  { %240 = vmatprep.subr.bf16.mxu0 %v824_v24  ;;  %v843_v6 = vld [vmem:[#allocation4] sm:$0xff]   ;;  %782 = vmatprep.subr.bf16.mxu1 %v842_v5 }
  0x30   :  { %783 = vmatpush3.bf16.msra.mxu1 %v843_v6  ;;  %v144_v24 = vld [vmem:[%s1211_s4] sm:$0x3] }
  0x32   :  { %241 = vmatpush1.bf16.msra.mxu0 %v826_v25 }
  0x33   :  { %242 = vmatprep.subr.bf16.mxu0 %v827_v26 }
  0x36   :  { %243 = vmatpush1.bf16.msra.mxu0 %v829_v27 }
  0x37   :  { %244 = vmatprep.subr.bf16.mxu0 %v830_v28 }
  0x3a   :  { %245 = vmatpush1.bf16.msra.mxu0 %v832_v29 }
  0x3b   :  { %246 = vmatprep.subr.bf16.mxu0 %v833_v30 }
  0x3e   :  { %247 = vmatpush1.bf16.msra.mxu0 %v835_v31 }
  0x3f   :  { %248 = vmatprep.subr.bf16.mxu0 %v836_v32 }
  0x42   :  { %249 = vmatpush1.bf16.msra.mxu0 %v838_v34 }
  0x43   :  { %250 = vmatprep.subr.bf16.mxu0 %v839_v35 }
  0x46   :  { %251 = vmatpush1.bf16.msra.mxu0 %v841_v36 }
  0xb4   :  { %v60_v7 = vpop.xlane.xlu0 %59  ;;  %v64_v8 = vpop.xlane.xlu1 %63 }
  0xb5   :  { %v68_v9 = vmul.f32 0.0078125, %v60_v7  ;;  %v70_v10 = vmul.f32 0.0078125, %v64_v8  ;;  %v844_v7 = vld [vmem:[#allocation4 + $0x48] sm:$0xff]  }
  0xb6   :  { %v845_v8 = vld [vmem:[#allocation4 + $0x8] sm:$0xff]   ;;  %784 = vmatprep.subr.bf16.mxu1 %v844_v7 }
  0xb7   :  { %v72_v11 = vsub.f32 %v55_v0, %v68_v9  ;;  %v1030_v12 = vsub.f32 %v57_v1, %v70_v10  ;;  %785 = vmatpush3.bf16.msra.mxu1 %v845_v8  ;;  %v846_v9 = vld [vmem:[#allocation4 + $0x50] sm:$0xff]  }
  0xb8   :  { %v62_v13 = vpop.xlane.xlu0 %61  ;;  %v66_v14 = vpop.xlane.xlu1 %65  ;;  %v847_v10 = vld [vmem:[#allocation4 + $0x10] sm:$0xff]   ;;  %786 = vmatprep.subr.bf16.mxu1 %v846_v9  ;;  %v953_v9 = vmov -1.0  }
  0xb9   :  { %v69_v15 = vmul.f32 0.0078125, %v62_v13  ;;  %v76_v16 = vmul.f32 %v72_v11, %v72_v11  ;;  %v71_v17 = vmul.f32 0.0078125, %v66_v14  ;;  %v78_v20 = vmul.f32 %v1030_v12, %v1030_v12  ;;  %v850_v13 = vld [vmem:[#allocation4 + $0x60] sm:$0xff]  }
  0xba   :  { %v851_v14 = vld [vmem:[#allocation4 + $0x20] sm:$0xff]  }
  0xbb   :  { %v73_v18 = vsub.f32 %v56_v2, %v69_v15  ;;  %80 = vadd.xlane.f32.xlu0 %v76_v16  ;;  %v1032_v19 = vsub.f32 %v58_v3, %v71_v17  ;;  %787 = vmatpush3.bf16.msra.mxu1 %v847_v10  ;;  %v852_v15 = vld [vmem:[#allocation4 + $0x68] sm:$0xff]   ;;  %v854_v17 = vld [vmem:[#allocation4 + $0x70] sm:$0xff]  }
  0xbc   :  { %v853_v16 = vld [vmem:[#allocation4 + $0x28] sm:$0xff]  }
  0xbd   :  { %v77_v21 = vmul.f32 %v73_v18, %v73_v18  ;;  %v79_v22 = vmul.f32 %v1032_v19, %v1032_v19 }
  0xbf   :  { %84 = vadd.xlane.f32.xlu0 %v78_v20  ;;  %82 = vadd.xlane.f32.xlu1 %v77_v21  ;;  %v857_v20 = vld [vmem:[#allocation4 + $0x38] sm:$0xff]   ;;  %v146_v21 = vlaneseq }
  0xc3   :  { %86 = vadd.xlane.f32.xlu1 %v79_v22  ;;  %v147_v22 = vshrl.u32 %v146_v21, 7 }
  0xc5   :  { %v148_v23 = vsub.s32 0, %v147_v22  ;;  %v152_v25 = vsub.s32 1, %v147_v22 }
  0xc7   :  { %v149_v26 = vrot.slane %v144_v24, %v148_v23  ;;  %v153_v27 = vrot.slane %v144_v24, %v152_v25 }
 0x148   :  { %v81_v37 = vpop.xlane.xlu0 %80 }
 0x149   :  { %v88_v38 = vmul.f32 0.0078125, %v81_v37 }
 0x14b   :  { %v92_v39 = vadd.f32 1e-05, %v88_v38 }
 0x14c   :  { %v83_v40 = vpop.xlane.xlu1 %82  ;;  %v85_v41 = vpop.xlane.xlu0 %84 }
 0x14d   :  { %858 = vrsqrt.f32 %v92_v39  ;;  %v89_v42 = vmul.f32 0.0078125, %v83_v40  ;;  %v90_v43 = vmul.f32 0.0078125, %v85_v41 }
 0x14f   :  { %v93_v44 = vadd.f32 1e-05, %v89_v42  ;;  %v94_v45 = vadd.f32 1e-05, %v90_v43 }
 0x150   :  { %v87_v46 = vpop.xlane.xlu1 %86 }
 0x151   :  { %860 = vrsqrt.f32 %v93_v44  ;;  %v91_v47 = vmul.f32 0.0078125, %v87_v46 }
 0x152   :  { %862 = vrsqrt.f32 %v94_v45 }
 0x153   :  { %v95_v48 = vadd.f32 1e-05, %v91_v47 }
 0x155   :  { %864 = vrsqrt.f32 %v95_v48 }
 0x157   :  { %v859_v49 = vpop.eup %858 }
 0x158   :  { %v100_v50 = vmul.f32 %v859_v49, %v72_v11  ;;  %v848_v11 = vld [vmem:[#allocation4 + $0x58] sm:$0xff]  }
 0x159   :  { %788 = vmatprep.subr.bf16.mxu1 %v848_v11 }
 0x15a   :  { %v111_v54 = vmul.f32 %v747_v51, %v100_v50 }
 0x15b   :  { %v861_v52 = vpop.eup %860 }
 0x15c   :  { %v101_v53 = vmul.f32 %v861_v52, %v73_v18  ;;  %v863_v55 = vpop.eup %862  ;;  %v122_v59 = vadd.f32 %v748_v56, %v111_v54  ;;  %v855_v18 = vld [vmem:[#allocation4 + $0x30] sm:$0xff]  }
 0x15d   :  { %v102_v61 = vmul.f32 %v863_v55, %v1030_v12  ;;  %v849_v12 = vld [vmem:[#allocation4 + $0x18] sm:$0xff]  }
 0x15e   :  { %v112_v57 = vmul.f32 %v747_v51, %v101_v53  ;;  %789 = vmatpush3.bf16.msra.mxu1 %v849_v12 }
 0x15f   :  { %v865_v58 = vpop.eup %864  ;;  %v113_v1 = vmul.f32 %v747_v51, %v102_v61  ;;  %790 = vmatprep.subr.bf16.mxu1 %v850_v13 }
 0x160   :  { %v123_v60 = vadd.f32 %v748_v56, %v112_v57  ;;  %v103_v62 = vmul.f32 %v865_v58, %v1032_v19  ;;  %v856_v19 = vld [vmem:[#allocation4 + $0x78] sm:$0xff]  }
 0x161   :  { %v124_v3 = vadd.f32 %v748_v56, %v113_v1 }
 0x162   :  { %v126_v63 = vpack.c.bf16 %v123_v60, %v122_v59  ;;  %v114_v0 = vmul.f32 %v747_v51, %v103_v62  ;;  %791 = vmatpush3.bf16.msra.mxu1 %v851_v14 }
 0x163   :  { %792 = vmatprep.subr.bf16.mxu1 %v852_v15 }
 0x164   :  { %269 = vmatmul.mubr.bf16.vlgmr.msra.gmra.mrb[0].mxu0 %v126_v63  ;;  %v125_v2 = vadd.f32 %v748_v56, %v114_v0 }
 0x165   :  { %278 = vmatprep.mubr.bf16.mxu0 %v952_v33 }
 0x166   :  { %v127_v4 = vpack.c.bf16 %v125_v2, %v124_v3  ;;  %793 = vmatpush3.bf16.msra.mxu1 %v853_v16 }
 0x167   :  { %794 = vmatprep.subr.bf16.mxu1 %v854_v17 }
 0x16a   :  { %795 = vmatpush3.bf16.msra.mxu1 %v855_v18 }
 0x16b   :  { %796 = vmatprep.subr.bf16.mxu1 %v856_v19 }
 0x16c   :  { %279 = vmatmul.mubr.bf16.gmra.mrb[4].mxu0 %v127_v4 }
 0x16e   :  { %797 = vmatpush3.bf16.msra.mxu1 %v857_v20 }
 0x237   :  { %v270_v28 = vpop.f32.mrb[0].mxu0 }
 0x238   :  { %v271_v29 = vadd.f32 %v270_v28, %v149_v26  ;;  %v272_v30 = vpop.f32.mrb[1].mxu0 }
 0x239   :  { %v273_v31 = vadd.f32 %v272_v30, %v153_v27  ;;  %v274_v32 = vpop.f32.mrb[2].mxu0 }
 0x23a   :  { %v297_v33 = vmul.f32 0.70710677, %v271_v29  ;;  %v275_v34 = vadd.f32 %v274_v32, %v149_v26  ;;  %v276_v35 = vpop.f32.mrb[3].mxu0  ;;  %v1077_v1 = vmul.f32 0.5, %v271_v29 }
 0x23b   :  { %v1049_v36 = vmul.f32 0.70710677, %v273_v31  ;;  %v1051_v37 = vadd.f32 %v276_v35, %v153_v27  ;;  %v1079_v2 = vmul.f32 0.5, %v273_v31 }
 0x23c   :  { %v321_v38 = vand.u32 2147483647, %v297_v33  ;;  %v1053_v39 = vmul.f32 0.70710677, %v275_v34  ;;  %vm305_vm0 = vcmp.ge.f32.partialorder %v297_v33, 0.0  ;;  %v1082_v6 = vmul.f32 0.5, %v275_v34 }
 0x23d   :  { %v322_v40 = vand.u32 2147483647, %v1049_v36  ;;  %v1058_v44 = vmul.f32 0.70710677, %v1051_v37  ;;  %v1085_v10 = vsel %vm305_vm0, 1.0, %v953_v9  ;;  %vm306_vm2 = vcmp.ge.f32.partialorder %v1049_v36, 0.0 }
 0x23e   :  { %v329_v41 = vmul.f32 0.3275911, %v321_v38  ;;  %v323_v42 = vand.u32 2147483647, %v1053_v39  ;;  %v433_v59 = vsub.f32 0.0, %v321_v38  ;;  %vm307_vm1 = vcmp.ge.f32.partialorder %v1053_v39, 0.0 }
 0x23f   :  { %v330_v43 = vmul.f32 0.3275911, %v322_v40  ;;  %v280_v47 = vpop.f32.mrb[4].mxu0  ;;  %v324_v49 = vand.u32 2147483647, %v1058_v44  ;;  %v434_v62 = vsub.f32 0.0, %v322_v40 }
 0x240   :  { %v337_v45 = vadd.f32 1.0, %v329_v41  ;;  %v331_v46 = vmul.f32 0.3275911, %v323_v42  ;;  %v282_v50 = vpop.f32.mrb[5].mxu0  ;;  %v1061_v55 = vadd.f32 %v280_v47, %v149_v26  ;;  %v435_v3 = vsub.f32 0.0, %v323_v42 }
 0x241   :  { %v338_v48 = vadd.f32 1.0, %v330_v43  ;;  %v284_v52 = vpop.f32.mrb[6].mxu0  ;;  %v332_v53 = vmul.f32 0.3275911, %v324_v49  ;;  %v1063_v56 = vadd.f32 %v282_v50, %v153_v27  ;;  %v441_v5 = vmul.f32 %v433_v59, %v321_v38 }
 0x242   :  { %866 = vrcp.f32 %v337_v45  ;;  %v339_v51 = vadd.f32 1.0, %v331_v46  ;;  %v286_v54 = vpop.f32.mrb[7].mxu0  ;;  %v1065_v58 = vadd.f32 %v284_v52, %v149_v26  ;;  %v1068_v60 = vmul.f32 0.70710677, %v1061_v55 }
 0x243   :  { %868 = vrcp.f32 %v338_v48  ;;  %v340_v57 = vadd.f32 1.0, %v332_v53  ;;  %v1071_v61 = vmul.f32 0.70710677, %v1063_v56  ;;  %v436_v7 = vsub.f32 0.0, %v324_v49 }
 0x244   :  { %870 = vrcp.f32 %v339_v51  ;;  %v325_v63 = vand.u32 2147483647, %v1068_v60  ;;  %v1075_v0 = vmul.f32 0.70710677, %v1065_v58  ;;  %v442_v15 = vmul.f32 %v434_v62, %v322_v40 }
 0x245   :  { %872 = vrcp.f32 %v340_v57  ;;  %v326_v4 = vand.u32 2147483647, %v1071_v61  ;;  %v1093_v17 = vadd.f32 %v286_v54, %v153_v27  ;;  %v443_v19 = vmul.f32 %v435_v3, %v323_v42 }
 0x246   :  { %v333_v8 = vmul.f32 0.3275911, %v325_v63  ;;  %v437_v11 = vsub.f32 0.0, %v325_v63  ;;  %v1088_v13 = vand.u32 2147483647, %v1075_v0  ;;  %v444_v24 = vmul.f32 %v436_v7, %v324_v49 }
 0x247   :  { %v334_v12 = vmul.f32 0.3275911, %v326_v4  ;;  %v449_v23 = vmul.f32 1.442695, %v441_v5  ;;  %v451_v27 = vmul.f32 1.442695, %v442_v15 }
 0x248   :  { %v341_v16 = vadd.f32 1.0, %v333_v8  ;;  %v335_v21 = vmul.f32 0.3275911, %v1088_v13  ;;  %v445_v26 = vmul.f32 %v437_v11, %v325_v63  ;;  %v1105_v30 = vsel %vm307_vm1, 1.0, %v953_v9 }
 0x249   :  { %v342_v20 = vadd.f32 1.0, %v334_v12  ;;  %v438_v31 = vsub.f32 0.0, %v326_v4  ;;  %v1108_v32 = vmul.f32 0.70710677, %v1093_v17  ;;  %v453_v35 = vmul.f32 1.442695, %v443_v19 }
 0x24a   :  { %874 = vrcp.f32 %v341_v16  ;;  %v343_v28 = vadd.f32 1.0, %v335_v21  ;;  %vm308_vm3 = vcmp.ge.f32.partialorder %v1058_v44, 0.0  ;;  %v455_v41 = vmul.f32 1.442695, %v444_v24 }
 0x24b   :  { %876 = vrcp.f32 %v342_v20  ;;  %v328_v39 = vand.u32 2147483647, %v1108_v32  ;;  %v457_v45 = vmul.f32 1.442695, %v445_v26  ;;  %v446_v46 = vmul.f32 %v438_v31, %v326_v4 }
 0x24c   :  { %v1090_v14 = vpop.eup %866  ;;  %878 = vrcp.f32 %v343_v28  ;;  %v439_v52 = vsub.f32 0.0, %v1088_v13  ;;  %v1127_v4 = vsel %vm306_vm2, 1.0, %v953_v9  ;;  %v1140_v36 = vsel %vm308_vm3, 1.0, %v953_v9 }
 0x24d   :  { %v361_v18 = vmul.f32 1.0614054, %v1090_v14  ;;  %v1097_v22 = vpop.eup %868  ;;  %880 = vpow2.f32 %v449_v23  ;;  %v336_v47 = vmul.f32 0.3275911, %v328_v39  ;;  %v459_v3 = vmul.f32 1.442695, %v446_v46 }
 0x24e   :  { %v1100_v29 = vpop.eup %870  ;;  %v362_v38 = vmul.f32 1.0614054, %v1097_v22  ;;  %882 = vpow2.f32 %v451_v27  ;;  %v440_v28 = vsub.f32 0.0, %v328_v39  ;;  %vm309_vm4 = vcmp.ge.f32.partialorder %v1068_v60, 0.0 }
 0x24f   :  { %v369_v25 = vadd.f32 -1.4531521, %v361_v18  ;;  %v363_v34 = vmul.f32 1.0614054, %v1100_v29  ;;  %v1113_v40 = vpop.eup %872  ;;  %884 = vpow2.f32 %v453_v35  ;;  %v344_v53 = vadd.f32 1.0, %v336_v47 }
 0x250   :  { %v364_v48 = vmul.f32 1.0614054, %v1113_v40  ;;  %v370_v51 = vadd.f32 -1.4531521, %v362_v38  ;;  %886 = vpow2.f32 %v455_v41  ;;  %v447_v18 = vmul.f32 %v439_v52, %v1088_v13 }
 0x251   :  { %v377_v33 = vmul.f32 %v1090_v14, %v369_v25  ;;  %v371_v43 = vadd.f32 -1.4531521, %v363_v34  ;;  %888 = vpow2.f32 %v457_v45  ;;  %vm311_vm5 = vcmp.ge.f32.partialorder %v1075_v0, 0.0 }
 0x252   :  { %v372_v54 = vadd.f32 -1.4531521, %v364_v48  ;;  %v378_v62 = vmul.f32 %v1097_v22, %v370_v51  ;;  %890 = vrcp.f32 %v344_v53  ;;  %v461_v41 = vmul.f32 1.442695, %v447_v18 }
 0x253   :  { %v385_v42 = vadd.f32 1.4214138, %v377_v33  ;;  %v379_v50 = vmul.f32 %v1100_v29, %v371_v43  ;;  %892 = vpow2.f32 %v459_v3  ;;  %vm310_vm6 = vcmp.ge.f32.partialorder %v1071_v61, 0.0 }
 0x254   :  { %v1122_v63 = vpop.eup %874  ;;  %v380_v5 = vmul.f32 %v1113_v40, %v372_v54  ;;  %v386_v15 = vadd.f32 1.4214138, %v378_v62  ;;  %894 = vpow2.f32 %v461_v41  ;;  %v293_v0 = vmul.f32 0.5, %v1061_v55 }
 0x255   :  { %v393_v49 = vmul.f32 %v1090_v14, %v385_v42  ;;  %v387_v59 = vadd.f32 1.4214138, %v379_v50  ;;  %v1130_v7 = vpop.eup %876  ;;  %v365_v12 = vmul.f32 1.0614054, %v1122_v63  ;;  %vm312_vm7 = vcmp.ge.f32.partialorder %v1108_v32, 0.0 }
 0x256   :  { %v366_v16 = vmul.f32 1.0614054, %v1130_v7  ;;  %v388_v19 = vadd.f32 1.4214138, %v380_v5  ;;  %v394_v24 = vmul.f32 %v1097_v22, %v386_v15  ;;  %v1143_v25 = vpop.eup %878  ;;  %v296_v55 = vmul.f32 0.5, %v1093_v17 }
 0x257   :  { %v401_v57 = vadd.f32 -0.28449672, %v393_v49  ;;  %v395_v11 = vmul.f32 %v1100_v29, %v387_v59  ;;  %v373_v23 = vadd.f32 -1.4531521, %v365_v12  ;;  %v881_v31 = vpop.eup %880  ;;  %v367_v34 = vmul.f32 1.0614054, %v1143_v25 }
 0x258   :  { %v374_v26 = vadd.f32 -1.4531521, %v366_v16  ;;  %v396_v27 = vmul.f32 %v1113_v40, %v388_v19  ;;  %v883_v35 = vpop.eup %882  ;;  %v402_v42 = vadd.f32 -0.28449672, %v394_v24 }
 0x259   :  { %v409_v8 = vmul.f32 %v1090_v14, %v401_v57  ;;  %v403_v21 = vadd.f32 -0.28449672, %v395_v11  ;;  %v381_v33 = vmul.f32 %v1122_v63, %v373_v23  ;;  %v885_v45 = vpop.eup %884  ;;  %v375_v49 = vadd.f32 -1.4531521, %v367_v34 }
 0x25a   :  { %v382_v38 = vmul.f32 %v1130_v7, %v374_v26  ;;  %v404_v43 = vadd.f32 -0.28449672, %v396_v27  ;;  %v887_v50 = vpop.eup %886  ;;  %v410_v52 = vmul.f32 %v1097_v22, %v402_v42 }
 0x25b   :  { %v417_v20 = vadd.f32 0.2548296, %v409_v8  ;;  %v411_v44 = vmul.f32 %v1100_v29, %v403_v21  ;;  %v389_v48 = vadd.f32 1.4214138, %v381_v33  ;;  %v889_v54 = vpop.eup %888  ;;  %v383_v3 = vmul.f32 %v1143_v25, %v375_v49 }
 0x25c   :  { %v390_v51 = vadd.f32 1.4214138, %v382_v38  ;;  %v412_v53 = vmul.f32 %v1113_v40, %v404_v43  ;;  %v1156_v5 = vpop.eup %890 }
 0x25d   :  { %v425_v13 = vmul.f32 %v1090_v14, %v417_v20  ;;  %v419_v47 = vadd.f32 0.2548296, %v411_v44  ;;  %v448_v14 = vmul.f32 %v440_v28, %v328_v39  ;;  %v397_v62 = vmul.f32 %v1122_v63, %v389_v48  ;;  %v893_v27 = vpop.eup %892 }
 0x25e   :  { %v398_v8 = vmul.f32 %v1130_v7, %v390_v51  ;;  %v418_v39 = vadd.f32 0.2548296, %v410_v52  ;;  %v420_v11 = vadd.f32 0.2548296, %v412_v53  ;;  %v391_v18 = vadd.f32 1.4214138, %v383_v3  ;;  %v895_v53 = vpop.eup %894 }
 0x25f   :  { %v465_v46 = vmul.f32 %v881_v31, %v425_v13  ;;  %v427_v59 = vmul.f32 %v1100_v29, %v419_v47  ;;  %v405_v16 = vadd.f32 -0.28449672, %v397_v62  ;;  %v368_v29 = vmul.f32 1.0614054, %v1156_v5 }
 0x260   :  { %v406_v19 = vadd.f32 -0.28449672, %v398_v8  ;;  %v426_v20 = vmul.f32 %v1097_v22, %v418_v39  ;;  %v428_v21 = vmul.f32 %v1113_v40, %v420_v11  ;;  %v399_v26 = vmul.f32 %v1143_v25, %v391_v18 }
 0x261   :  { %v473_v57 = vsub.f32 1.0, %v465_v46  ;;  %v467_v15 = vmul.f32 %v885_v45, %v427_v59  ;;  %v413_v24 = vmul.f32 %v1122_v63, %v405_v16  ;;  %v463_v28 = vmul.f32 1.442695, %v448_v14 }
 0x262   :  { %v414_v31 = vmul.f32 %v1130_v7, %v406_v19  ;;  %v466_v13 = vmul.f32 %v883_v35, %v426_v20  ;;  %v468_v44 = vmul.f32 %v887_v50, %v428_v21  ;;  %v407_v41 = vadd.f32 -0.28449672, %v399_v26 }
 0x263   :  { %v481_v12 = vmul.f32 %v473_v57, %v1085_v10  ;;  %v475_v23 = vsub.f32 1.0, %v467_v15  ;;  %v376_v10 = vadd.f32 -1.4531521, %v368_v29  ;;  %v421_v38 = vadd.f32 0.2548296, %v413_v24 }
 0x264   :  { %v422_v22 = vadd.f32 0.2548296, %v414_v31  ;;  %v474_v42 = vsub.f32 1.0, %v466_v13  ;;  %v476_v43 = vsub.f32 1.0, %v468_v44  ;;  %v415_v47 = vmul.f32 %v1143_v25, %v407_v41  ;;  %v765_v41 = vld [vmem:[%s1213_s6] ss:$0 sm:$0xff] }
 0x265   :  { %v489_v33 = vadd.f32 1.0, %v481_v12  ;;  %v483_v34 = vmul.f32 %v475_v23, %v1105_v30  ;;  %v384_v40 = vmul.f32 %v1156_v5, %v376_v10  ;;  %v429_v46 = vmul.f32 %v1122_v63, %v421_v38 }
 0x266   :  { %896 = vpow2.f32 %v463_v28  ;;  %v430_v48 = vmul.f32 %v1130_v7, %v422_v22  ;;  %v482_v49 = vmul.f32 %v474_v42, %v1127_v4  ;;  %v484_v30 = vmul.f32 %v476_v43, %v1140_v36 }
 0x267   :  { %v491_v45 = vadd.f32 1.0, %v483_v34  ;;  %v392_v35 = vadd.f32 1.4214138, %v384_v40  ;;  %v497_v50 = vmul.f32 %v489_v33, %v1077_v1  ;;  %v469_v14 = vmul.f32 %v889_v54, %v429_v46 }
 0x268   :  { %v423_v52 = vadd.f32 0.2548296, %v415_v47  ;;  %v292_v57 = vmul.f32 0.5, %v1051_v37  ;;  %v490_v59 = vadd.f32 1.0, %v482_v49  ;;  %v492_v62 = vadd.f32 1.0, %v484_v30 }
 0x269   :  { %v499_v51 = vmul.f32 %v491_v45, %v1082_v6  ;;  %v400_v63 = vmul.f32 %v1156_v5, %v392_v35  ;;  %v317_v7 = vsel %vm309_vm4, 1.0, %v953_v9  ;;  %v477_v4 = vsub.f32 1.0, %v469_v14 }
 0x26a   :  { %v431_v36 = vmul.f32 %v1143_v25, %v423_v52  ;;  %v470_v1 = vmul.f32 %v893_v27, %v430_v48  ;;  %v498_v6 = vmul.f32 %v490_v59, %v1079_v2  ;;  %v500_v54 = vmul.f32 %v492_v62, %v292_v57 }
 0x26b   :  { %v505_v3 = vpack.c.bf16 %v499_v51, %v497_v50  ;;  %v408_v8 = vadd.f32 -0.28449672, %v400_v63  ;;  %v485_v39 = vmul.f32 %v477_v4, %v317_v7  ;;  %v319_v16 = vsel %vm311_vm5, 1.0, %v953_v9 }
 0x26c   :  { %v471_v37 = vmul.f32 %v895_v53, %v431_v36  ;;  %v506_v12 = vpack.c.bf16 %v500_v54, %v498_v6  ;;  %v478_v60 = vsub.f32 1.0, %v470_v1  ;;  %v318_v20 = vsel %vm310_vm6, 1.0, %v953_v9 }
 0x26d   :  { %v416_v11 = vmul.f32 %v1156_v5, %v408_v8  ;;  %v493_v19 = vadd.f32 1.0, %v485_v39  ;;  %v295_v21 = vmul.f32 0.5, %v1065_v58  ;;  %v320_v31 = vsel %vm312_vm7, 1.0, %v953_v9 }
 0x26e   :  { %v479_v15 = vsub.f32 1.0, %v471_v37  ;;  %676 = vmatprep.mubr.bf16.mxu1 %v506_v12  ;;  %v486_v24 = vmul.f32 %v478_v60, %v318_v20 }
 0x26f   :  { %v424_v25 = vadd.f32 0.2548296, %v416_v11  ;;  %677 = vmatmul.mubr.bf16.vlgmr.msra.gmra.mrb[0].mxu1 %v505_v3  ;;  %v501_v26 = vmul.f32 %v493_v19, %v293_v0 }
 0x270   :  { %v897_v18 = vpop.eup %896  ;;  %v487_v29 = vmul.f32 %v479_v15, %v319_v16  ;;  %v494_v13 = vadd.f32 1.0, %v486_v24 }
 0x271   :  { %v432_v2 = vmul.f32 %v1156_v5, %v424_v25  ;;  %v294_v5 = vmul.f32 0.5, %v1063_v56 }
 0x272   :  { %v495_v23 = vadd.f32 1.0, %v487_v29 }
 0x273   :  { %v472_v61 = vmul.f32 %v897_v18, %v432_v2  ;;  %v502_v34 = vmul.f32 %v494_v13, %v294_v5 }
 0x274   :  { %v503_v28 = vmul.f32 %v495_v23, %v295_v21 }
 0x275   :  { %v480_v27 = vsub.f32 1.0, %v472_v61 }
 0x276   :  { %v507_v10 = vpack.c.bf16 %v503_v28, %v501_v26 }
 0x277   :  { %v488_v44 = vmul.f32 %v480_v27, %v320_v31 }
 0x279   :  { %v496_v33 = vadd.f32 1.0, %v488_v44 }
 0x27b   :  { %v504_v58 = vmul.f32 %v496_v33, %v296_v55 }
 0x27d   :  { %v508_v38 = vpack.c.bf16 %v504_v58, %v502_v34 }
 0x27f   :  { %684 = vmatprep.mubr.bf16.mxu1 %v508_v38 }
 0x280   :  { %685 = vmatmul.mubr.bf16.gmra.mrb[4].mxu1 %v507_v10 }
 0x342   :  { %v798_v32 = vpop.f32.mrb[0].mxu1 }
 0x343   :  { %v799_v22 = vpop.f32.mrb[1].mxu1 }
 0x344   :  { %v800_v9 = vadd.f32 %v799_v22, %v798_v32  ;;  %v801_v40 = vpop.f32.mrb[2].mxu1 }
 0x345   :  { %v802_v42 = vpop.f32.mrb[3].mxu1 }
 0x346   :  { %v679_v43 = vadd.f32 %v800_v9, %v765_v41  ;;  %v803_v45 = vadd.f32 %v802_v42, %v801_v40 }
 0x348   :  { %731 = vst [vmem:[%s1214_s7] sm:$0xff] %v679_v43  ;;  %v682_v56 = vadd.f32 %v803_v45, %v765_v41 }
 0x34a   :  { %733 = vst [vmem:[%s1214_s7 + $0x8] sm:$0xff] %v682_v56 }
 0x353   :  { %v804_v17 = vpop.f32.mrb[4].mxu1 }
 0x354   :  { %v805_v46 = vpop.f32.mrb[5].mxu1 }
 0x355   :  { %v806_v47 = vadd.f32 %v805_v46, %v804_v17  ;;  %v807_v48 = vpop.f32.mrb[6].mxu1 }
 0x356   :  { %v808_v35 = vpop.f32.mrb[7].mxu1 }
 0x357   :  { %v687_v49 = vadd.f32 %v806_v47, %v765_v41 }
 0x359   :  { %735 = vst [vmem:[%s1214_s7 + $0x10] sm:$0xff] %v687_v49 }
 0x35a   :  { %741 = vsyncpa [#allocation3], 1 }
 0x35b   :  { %742 = vsyncpa [#allocation5], 1 }

</bundles_post_ra>
